<compile_context>
chip_gen: v6e
topology: v6e:2x2x1
jax: 0.10.0
libtpu: 0.0.40
codegen_flags: <defaults>
</compile_context>

<pallas_src>
import jax
import jax.numpy as jnp
from jax.experimental import pallas as pl
from jax.experimental.pallas import tpu as pltpu

LANES = 128
# ~2 MiB per block -> 2 operands x 2 pipeline buffers ~= 8 MiB VMEM.
_TARGET_BLOCK_BYTES = 2 * 1024 * 1024


def _relpu_kernel(a_ref, b_ref, c_ref, x_ref, o_ref):
    # a_ref, b_ref, c_ref: SMEM f32 scalars of shape (1,)
    a = a_ref[0]
    b = b_ref[0]
    c = c_ref[0]
    x = x_ref[...].astype(jnp.float32)
    pos = jnp.maximum(x, 0.0)                 # select; no compare->float->mul
    powb = jnp.power(pos + 1.0, b)            # (x+1)**b on the positive branch (base >= 1)
    y_pos = c * (x + a * (powb - 1.0))        # == c * (x + a*(x+1)**b - a)
    o_ref[...] = jnp.where(x > 0.0, y_pos, x).astype(o_ref.dtype)


def relpu_pallas(x, a, b, c):
    """Elementwise Relpu applied to an arbitrary-shaped float array."""
    orig_shape = x.shape
    dtype = x.dtype
    flat = x.reshape(-1)
    n = flat.shape[0]

    # Pad only to a multiple of 128 lanes (usually a no-op for NCHW inputs).
    n_pad = pl.cdiv(n, LANES) * LANES
    padded = n_pad != n
    if padded:
        flat = jnp.pad(flat, (0, n_pad - n))

    rows = n_pad // LANES
    x2d = flat.reshape(rows, LANES)

    itemsize = jnp.dtype(dtype).itemsize
    # Large block rows, rounded to a multiple of 32 sublanes (covers the
    # packing requirement for f32 / bf16 / int8 alike).
    max_block_rows = max(32, (_TARGET_BLOCK_BYTES // (LANES * itemsize)) // 32 * 32)
    if rows <= max_block_rows:
        block_rows = rows                       # full-extent block: always legal
        grid = (1,)
    else:
        block_rows = max_block_rows
        grid = (pl.cdiv(rows, block_rows),)     # Pallas masks the partial tail block

    a1 = jnp.asarray(a, dtype=jnp.float32).reshape(1)
    b1 = jnp.asarray(b, dtype=jnp.float32).reshape(1)
    c1 = jnp.asarray(c, dtype=jnp.float32).reshape(1)

    cost = pl.CostEstimate(
        flops=8 * n_pad,
        transcendentals=2 * n_pad,              # pow -> exp(b * log(.))
        bytes_accessed=2 * n_pad * itemsize,
    )

    out2d = pl.pallas_call(
        _relpu_kernel,
        out_shape=jax.ShapeDtypeStruct((rows, LANES), dtype),
        grid_spec=pltpu.PrefetchScalarGridSpec(
            num_scalar_prefetch=0,
            grid=grid,
            in_specs=[
                pl.BlockSpec(memory_space=pltpu.SMEM),   # a
                pl.BlockSpec(memory_space=pltpu.SMEM),   # b
                pl.BlockSpec(memory_space=pltpu.SMEM),   # c
                pl.BlockSpec((block_rows, LANES), lambda i: (i, 0)),
            ],
            out_specs=pl.BlockSpec((block_rows, LANES), lambda i: (i, 0)),
        ),
        compiler_params=pltpu.CompilerParams(
            dimension_semantics=("parallel",),
        ),
        cost_estimate=cost,
    )(a1, b1, c1, x2d)

    out = out2d.reshape(-1)
    if padded:
        out = out[:n]
    return out.reshape(orig_shape)


class RelpuPallas:
    """JAX/Pallas equivalent of the PyTorch Relpu module (functional, no in-place)."""

    def __init__(self, key):
        ka, kb, kc = jax.random.split(key, 3)
        # Matches nn.Parameter(0.01*randn(1)), (0.01*randn(1)+1), (0.01*randn(1)+1)
        self.weight_a = 0.01 * jax.random.normal(ka, (1,), dtype=jnp.float32)
        self.weight_b = 0.01 * jax.random.normal(kb, (1,), dtype=jnp.float32) + 1.0
        self.weight_c = 0.01 * jax.random.normal(kc, (1,), dtype=jnp.float32) + 1.0

    def __call__(self, x):
        return relpu_pallas(x, self.weight_a, self.weight_b, self.weight_c)

    def weight_decay(self, n1, n2):
        return n1 * jnp.sum(self.weight_a ** 2) + n2 * jnp.sum(self.weight_b ** 2)


def _relpu_ref(x, a, b, c):
    # Pure-JAX reference matching the PyTorch forward.
    xf = x.astype(jnp.float32)
    base = jnp.maximum(xf, 0.0) + 1.0          # only the x>0 branch uses the pow
    y_pos = c * (xf + a * jnp.power(base, b) - a)
    return jnp.where(xf > 0.0, y_pos, xf).astype(x.dtype)


if __name__ == "__main__":
    key = jax.random.PRNGKey(0)
    k_param, k_x = jax.random.split(key)

    module = RelpuPallas(k_param)

    # Small NCHW input: batch=2, channels=4, spatial=16x16 (2048 elems, 128-aligned)
    x = jax.random.normal(k_x, (2, 4, 16, 16), dtype=jnp.float32)

    y = module(x)
    y = jax.block_until_ready(y)

    y_ref = _relpu_ref(x, module.weight_a[0], module.weight_b[0], module.weight_c[0])
    assert y.shape == x.shape and y.dtype == x.dtype
    assert jnp.allclose(y, y_ref, atol=1e-5, rtol=1e-5), "mismatch vs reference"

    print("KERNEL_OK")
</pallas_src>

<mosaic_0001>
module attributes {stable_mosaic.version = 11 : i64} {
  func.func @_relpu_kernel(%arg0: i32, %arg1: memref<1xf32, #tpu.memory_space<smem>>, %arg2: memref<1xf32, #tpu.memory_space<smem>>, %arg3: memref<1xf32, #tpu.memory_space<smem>>, %arg4: memref<16x128xf32, #tpu.memory_space<vmem>>, %arg5: memref<16x128xf32, #tpu.memory_space<vmem>>) attributes {dimension_semantics = [#tpu.dimension_semantics<parallel>], iteration_bounds = array<i64: 1>, scalar_prefetch = 0 : i64, scratch_operands = 0 : i64, tpu.core_type = #tpu.core_type<tc>, window_params = [{transform_indices = @transform_0, window_bounds = array<i64: 1>}, {transform_indices = @transform_1, window_bounds = array<i64: 1>}, {transform_indices = @transform_2, window_bounds = array<i64: 1>}, {transform_indices = @transform_3, window_bounds = array<i64: 16, 128>}, {transform_indices = @transform_4, window_bounds = array<i64: 16, 128>}]} {
    %c0 = arith.constant 0 : index
    %0 = memref.load %arg1[%c0] : memref<1xf32, #tpu.memory_space<smem>>
    %c0_0 = arith.constant 0 : index
    %1 = memref.load %arg2[%c0_0] : memref<1xf32, #tpu.memory_space<smem>>
    %c0_1 = arith.constant 0 : index
    %2 = memref.load %arg3[%c0_1] : memref<1xf32, #tpu.memory_space<smem>>
    %c0_2 = arith.constant 0 : index
    %c0_3 = arith.constant 0 : index
    %3 = vector.load %arg4[%c0_2, %c0_3] : memref<16x128xf32, #tpu.memory_space<vmem>>, vector<16x128xf32>
    %cst = arith.constant 0.000000e+00 : f32
    %4 = vector.broadcast %cst : f32 to vector<16x128xf32>
    %5 = arith.maximumf %3, %4 : vector<16x128xf32>
    %cst_4 = arith.constant 1.000000e+00 : f32
    %6 = vector.broadcast %cst_4 : f32 to vector<16x128xf32>
    %7 = arith.addf %5, %6 : vector<16x128xf32>
    %8 = vector.broadcast %1 : f32 to vector<16x128xf32>
    %9 = math.powf %7, %8 : vector<16x128xf32>
    %cst_5 = arith.constant 1.000000e+00 : f32
    %10 = vector.broadcast %cst_5 : f32 to vector<16x128xf32>
    %11 = arith.subf %9, %10 : vector<16x128xf32>
    %12 = vector.broadcast %0 : f32 to vector<16x128xf32>
    %13 = arith.mulf %12, %11 : vector<16x128xf32>
    %14 = arith.addf %3, %13 : vector<16x128xf32>
    %15 = vector.broadcast %2 : f32 to vector<16x128xf32>
    %16 = arith.mulf %15, %14 : vector<16x128xf32>
    %cst_6 = arith.constant 0.000000e+00 : f32
    %17 = vector.broadcast %cst_6 : f32 to vector<16x128xf32>
    %18 = arith.cmpf ogt, %3, %17 : vector<16x128xf32>
    %19 = arith.select %18, %16, %3 : vector<16x128xi1>, vector<16x128xf32>
    %c0_7 = arith.constant 0 : index
    %c0_8 = arith.constant 0 : index
    %20 = vector.load %arg5[%c0_7, %c0_8] : memref<16x128xf32, #tpu.memory_space<vmem>>, vector<16x128xf32>
    tpu.vector_store %arg5[%c0_7, %c0_8], %19 {strides = array<i32>} : memref<16x128xf32, #tpu.memory_space<vmem>>, vector<16x128xf32>,
    return
  }
  func.func @transform_0(%arg0: i32) -> i32 {
    %c0_i32 = arith.constant 0 : i32
    %c0_i32_0 = arith.constant 0 : i32
    return %c0_i32 : i32
  }
  func.func @transform_1(%arg0: i32) -> i32 {
    %c0_i32 = arith.constant 0 : i32
    %c0_i32_0 = arith.constant 0 : i32
    return %c0_i32 : i32
  }
  func.func @transform_2(%arg0: i32) -> i32 {
    %c0_i32 = arith.constant 0 : i32
    %c0_i32_0 = arith.constant 0 : i32
    return %c0_i32 : i32
  }
  func.func @transform_3(%arg0: i32) -> (i32, i32) {
    %c0_i32 = arith.constant 0 : i32
    %c0_i32_0 = arith.constant 0 : i32
    return %arg0, %c0_i32 : i32, i32
  }
  func.func @transform_4(%arg0: i32) -> (i32, i32) {
    %c0_i32 = arith.constant 0 : i32
    %c0_i32_0 = arith.constant 0 : i32
    return %arg0, %c0_i32 : i32, i32
  }
}

</mosaic_0001>

<bundles_post_ra>
// kernel: tpu_custom_call.1
= control target key start
LH: loop header
LB: loop body
LE: loop exit
PB: predicated region body
PF: predicated region fallthrough
CT: control target
= control target key end

     0   :  { %12 = vsyncpa [#allocation6], 0  ;;  %s474_s0 = inlined_call_operand.<no memory space> [shape: f32[1], index: 0, kind: input, shape index: {}]   ;;  %s475_s1 = inlined_call_operand.<no memory space> [shape: f32[1], index: 1, kind: input, shape index: {}]   ;;  %s476_s2 = inlined_call_operand.<no memory space> [shape: f32[1], index: 2, kind: input, shape index: {}]   ;;  %s477_s3 = inlined_call_operand.hbm [shape: f32[16,128], index: 3, kind: input, shape index: {}]   ;;  %s478_s4 = inlined_call_operand.hbm [shape: f32[16,128], index: 4, kind: output, shape index: {}]  }
   0x1   :  { %13 = vsyncpa [#allocation7], 0  ;;  %s244_s15 = smov [#allocation5]  }
   0x2   :  { %s25_s16 = sshll.u32 %s244_s15, 4  ;;  %s26_s16 = int_to_ptr.vmem [resolvable:$true] %s25_s16 }
   0x3   :  { %s208_s17 = scalar_lea.vmem %s26_s16, 256  ;;  %p213_p1 = scmp.lt.s32.totalorder %s26_s16, %s26_s16 }
   0x4   :  { %p209_p0 = scmp.ne.s32.totalorder %s26_s16, %s208_s17  ;;  %p214_p2 = scmp.lt.s32.totalorder %s208_s17, %s208_s17 }
   0x6   :  { %p215_p3 = por %p214_p2, %p213_p1 }
   0x8   :  { %p216_p4 = pnand %p215_p3, %p209_p0 }
   0xa   :  { %219 = shalt.err (!%p216_p4)
}
   0xb   :  { %s245_s18 = smov 128   ;;  %s246_s19 = smov 8  }
   0xc   :  { %31 = dma.hbm_to_vmem [thread:$0]  %s477_s3, 256, %s26_s16, [#allocation6], %s245_s18, %s245_s18, %s246_s19  }
   0xd   :  { %240 = dma.done.wait [#allocation6], 256  }
   0xe   :  { %241 = vsyncadd [#allocation6], 4294967040  ;;  %v281_v0 = vld [vmem:[#allocation5] sm:$0xff]  ;;  %v283_v1 = vld [vmem:[#allocation5 + $0x8] sm:$0xff]  ;;  %v297_v7 = vstv %s475_s1  ;;  %v247_v22 = vmov 2139095040   ;;  %v248_v28 = vmov 0   ;;  %v49_v55 = vstv %s474_s0 }
   0xf   :  { %v40_v2 = vmax.f32 %v281_v0, 0.0  ;;  %v41_v3 = vmax.f32 %v283_v1, 0.0  ;;  %v301_v8 = vand.u32 2147483647, %v297_v7  ;;  %v91_v11 = vtrunc.f32 %v297_v7  ;;  %s249_s0 = smov [#allocation8]  }
  0x10   :  { %vm90_vm5 = vcmp.lt.f32.partialorder %v297_v7, 0  ;;  %v54_v62 = vstv %s476_s2  ;;  %s68_s26 = sshll.u32 %s249_s0, 4  ;;  %s69_s26 = int_to_ptr.vmem [resolvable:$true] %s68_s26 }
  0x11   :  { %v287_v4 = vadd.f32 1.0, %v40_v2  ;;  %v289_v5 = vadd.f32 1.0, %v41_v3  ;;  %v95_v10 = vtrunc.f32 %v301_v8  ;;  %vm479_vm0 = vcmp.eq.f32.partialorder %v301_v8, 2139095040  ;;  %s220_s2 = scalar_lea.vmem %s69_s26, 256  ;;  %p225_p6 = scmp.lt.s32.totalorder %s69_s26, %s69_s26 }
  0x12   :  { %vm92_vm1 = vcmp.ne.f32.partialorder %v297_v7, %v91_v11  ;;  %vm94_vm9 = vcmp.lt.f32.partialorder %v301_v8, 1266679808  ;;  %v122_v23 = vsel %vm90_vm5, 0, %v247_v22  ;;  %v110_v29 = vsel %vm90_vm5, 2139095040, %v248_v28  ;;  %p221_p5 = scmp.ne.s32.totalorder %s69_s26, %s220_s2  ;;  %p226_p7 = scmp.lt.s32.totalorder %s220_s2, %s220_s2 }
  0x13   :  { %v292_v6 = vand.u32 2147483647, %v287_v4  ;;  %v304_v9 = vand.u32 2147483647, %v289_v5  ;;  %v96_v12 = vcvt.f32.s32 %v95_v10  ;;  %vm313_vm2 = vmor %vm92_vm1, %vm479_vm0  ;;  %vm103_vm6 = vcmp.eq.f32.partialorder %v287_v4, 0 }
  0x14   :  { %vm99_vm4 = vmneg %vm313_vm2  ;;  %vm155_vm12 = vcmp.eq.f32.partialorder %v289_v5, 0  ;;  %vm102_vm15 = vcmp.lt.f32.partialorder %v287_v4, 0  ;;  %v123_v25 = vxor.u32 2147483648, %v122_v23  ;;  %vm157_vm0 = vcmp.lt.s32.totalorder %v289_v5, 0  ;;  %p227_p8 = por %p226_p7, %p225_p6 }
  0x15   :  { %192 = vlog2.f32 %v292_v6  ;;  %v97_v13 = vand.u32 1, %v96_v12  ;;  %vm106_vm7 = vcmp.gt.f32.partialorder %v292_v6, 1065353216  ;;  %vm329_vm10 = vmand %vm90_vm5, %vm103_vm6  ;;  %vm158_vm14 = vcmp.gt.f32.partialorder %v304_v9, 1065353216 }
  0x16   :  { %194 = vlog2.f32 %v304_v9  ;;  %vm335_vm11 = vmxor %vm90_vm5, %vm106_vm7  ;;  %p228_p9 = pnand %p227_p8, %p221_p5 }
  0x17   :  { %vm98_vm3 = vcmp.eq.s32.totalorder %v97_v13, 1  ;;  %vm117_vm1 = vmor %vm329_vm10, %vm335_vm11  ;;  %vm119_vm10 = vcmp.eq.f32.partialorder %v287_v4, 3212836864 }
  0x18   :  { %vm100_vm8 = vmand %vm98_vm3, %vm99_vm4  ;;  %v118_v31 = vsel %vm117_vm1, 2139095040, %v248_v28 }
  0x19   :  { %vm340_vm13 = vmand %vm94_vm9, %vm100_vm8  ;;  %vm480_vm8 = vcmp.lt.f32.partialorder %v289_v5, 0  ;;  %vm105_vm9 = vcmp.lt.s32.totalorder %v287_v4, 0  ;;  %v120_v38 = vsel %vm119_vm10, 1065353216, %v118_v31  ;;  %vm499_vm10 = vcmp.eq.f32.partialorder %v301_v8, 2139095040 }
  0x1a   :  { %vm356_vm3 = vmand %vm90_vm5, %vm155_vm12  ;;  %v124_v33 = vsel %vm340_vm13, %v123_v25, %v122_v23 }
  0x1b   :  { %vm362_vm4 = vmxor %vm90_vm5, %vm158_vm14  ;;  %vm127_vm14 = vcmp.ne.f32.partialorder %v287_v4, %v287_v4  ;;  %vm128_vm5 = vcmp.ne.f32.partialorder %v297_v7, %v297_v7  ;;  %v125_v40 = vsel %vm102_vm15, %v124_v33, %v122_v23 }
  0x1c   :  { %vm370_vm7 = vmand %vm102_vm15, %vm313_vm2 }
  0x1d   :  { %vm169_vm11 = vmor %vm356_vm3, %vm362_vm4  ;;  %vm88_vm3 = vcmp.eq.f32.partialorder %v297_v7, 0  ;;  %vm104_vm4 = vcmp.eq.f32.partialorder %v287_v4, 1065353216 }
  0x1e   :  { %vm395_vm1 = vmand %vm480_vm8, %vm313_vm2  ;;  %v170_v39 = vsel %vm169_vm11, 2139095040, %v248_v28  ;;  %vm171_vm2 = vcmp.eq.f32.partialorder %v289_v5, 3212836864  ;;  %vm107_vm8 = vcmp.eq.f32.partialorder %v292_v6, 2139095040 }
  0x1f   :  { %vm164_vm15 = vmand %vm157_vm0, %vm340_vm13  ;;  %v172_v47 = vsel %vm171_vm2, 1065353216, %v170_v39  ;;  %vm159_vm0 = vcmp.eq.f32.partialorder %v304_v9, 2139095040 }
  0x20   :  { %vm131_vm11 = vmor %vm104_vm4, %vm88_vm3 }
  0x21   :  { %vm501_vm4 = vmmov %vm499_vm10 }
  0x22   :  { %v193_v14 = vpop.eup %192 }
  0x23   :  { %v84_v16 = vmul.f32 %v193_v14, %v297_v7  ;;  %v195_v17 = vpop.eup %194 }
  0x24   :  { %v136_v18 = vmul.f32 %v195_v17, %v297_v7 }
  0x25   :  { %196 = vpow2.f32 %v84_v16 }
  0x26   :  { %198 = vpow2.f32 %v136_v18 }
  0x32   :  { %v197_v30 = vpop.eup %196 }
  0x33   :  { %v109_v32 = vsel %vm370_vm7, 2143289344, %v197_v30  ;;  %vm112_vm7 = vmand %vm105_vm9, %vm340_vm13  ;;  %v199_v36 = vpop.eup %198  ;;  %vm179_vm9 = vcmp.ne.f32.partialorder %v289_v5, %v289_v5  ;;  %vm500_vm13 = vcmp.lt.f32.partialorder %v289_v5, 0 }
  0x34   :  { %v111_v35 = vsel %vm103_vm6, %v110_v29, %v109_v32  ;;  %vm418_vm6 = vmor %vm127_vm14, %vm128_vm5  ;;  %v161_v42 = vsel %vm395_vm1, 2143289344, %v199_v36  ;;  %vm156_vm14 = vcmp.eq.f32.partialorder %v289_v5, 1065353216  ;;  %v177_v49 = vsel %vm500_vm13, %v124_v33, %v122_v23 }
  0x35   :  { %v113_v37 = vxor.u32 2147483648, %v111_v35  ;;  %v163_v44 = vsel %vm155_vm12, %v110_v29, %v161_v42  ;;  %vm89_vm12 = vcmp.eq.f32.partialorder %v297_v7, 1065353216  ;;  %vm181_vm1 = vmor %vm179_vm9, %vm128_vm5  ;;  %vm57_vm5 = vcmp.gt.f32.partialorder %v281_v0, 0.0 }
  0x36   :  { %v165_v46 = vxor.u32 2147483648, %v163_v44 }
  0x37   :  { %v114_v43 = vsel %vm112_vm7, %v113_v37, %v111_v35 }
  0x38   :  { %v121_v45 = vsel %vm499_vm10, %v120_v38, %v114_v43  ;;  %v166_v51 = vsel %vm164_vm15, %v165_v46, %v163_v44 }
  0x39   :  { %v126_v48 = vsel %vm107_vm8, %v125_v40, %v121_v45  ;;  %v173_v53 = vsel %vm501_vm4, %v172_v47, %v166_v51  ;;  %vm183_vm8 = vmor %vm156_vm14, %vm88_vm3  ;;  %vm58_vm3 = vcmp.gt.f32.partialorder %v283_v1, 0.0 }
  0x3a   :  { %v130_v50 = vsel %vm418_vm6, 2143289344, %v126_v48  ;;  %v178_v56 = vsel %vm159_vm0, %v177_v49, %v173_v53 }
  0x3b   :  { %v132_v52 = vsel %vm131_vm11, 1065353216, %v130_v50  ;;  %v182_v58 = vsel %vm181_vm1, 2143289344, %v178_v56 }
  0x3c   :  { %v133_v54 = vsel %vm89_vm12, %v287_v4, %v132_v52  ;;  %v184_v59 = vsel %vm183_vm8, 1065353216, %v182_v58 }
  0x3d   :  { %v80_v57 = vadd.f32 -1.0, %v133_v54  ;;  %v185_v61 = vsel %vm89_vm12, %v289_v5, %v184_v59 }
  0x3e   :  { %v81_v63 = vadd.f32 -1.0, %v185_v61 }
  0x3f   :  { %v50_v60 = vmul.f32 %v80_v57, %v49_v55 }
  0x40   :  { %v51_v3 = vmul.f32 %v81_v63, %v49_v55 }
  0x41   :  { %v52_v2 = vadd.f32 %v50_v60, %v281_v0 }
  0x42   :  { %v53_v6 = vadd.f32 %v51_v3, %v283_v1 }
  0x43   :  { %v55_v4 = vmul.f32 %v54_v62, %v52_v2 }
  0x44   :  { %v56_v5 = vmul.f32 %v54_v62, %v53_v6 }
  0x45   :  { %v59_v8 = vsel %vm57_vm5, %v55_v4, %v281_v0 }
  0x46   :  { %61 = vst [vmem:[#allocation8] sm:$0xff] %v59_v8  ;;  %v60_v7 = vsel %vm58_vm3, %v56_v5, %v283_v1 }
  0x47   :  { %62 = vst [vmem:[#allocation8 + $0x8] sm:$0xff] %v60_v7 }
  0x48   :  { %231 = shalt.err (!%p228_p9)
}
  0x49   :  { %74 = dma.vmem_to_hbm [thread:$0]  %s69_s26, 256, %s478_s4, [#allocation7], %s245_s18, %s245_s18, %s246_s19  }
  0x4a   :  { %242 = dma.done.wait [#allocation7], 256  }
  0x4b   :  { %243 = vsyncadd [#allocation7], 4294967040 }
  0x4c   :  { %78 = vsyncpa [#allocation6], 1 }
  0x4d   :  { %79 = vsyncpa [#allocation7], 1 }

</bundles_post_ra>
